<compile_context>
chip_gen: v5e
topology: v5e:2x2
jax: 0.10.0
libtpu: 0.0.40
codegen_flags: <defaults>
</compile_context>

<pallas_src>
import functools

import jax
import jax.numpy as jnp
from jax.experimental import pallas as pl
from jax.experimental.pallas import tpu as pltpu


def _round_up(x, m):
    return ((x + m - 1) // m) * m


def _vmem_capacity_bytes():
    try:
        return int(pltpu.get_tpu_info().vmem_capacity_bytes)
    except Exception:
        return 64 << 20  # conservative fallback (v7x per-TC physical VMEM)


# --------------------- fused kernel: no K reduction axis ---------------------

def _fc_sigmoid_kernel_fused(x_ref, w_ref, b_ref, o_ref, *scratch,
                             use_activation, cache_tanh, approx_sigmoid):
    if use_activation and cache_tanh:
        xt_ref, = scratch
        # j (axis 1) is marked "arbitrary": for each row-block i the first j
        # step computes tanh once; later j steps reuse it from VMEM.
        @pl.when(pl.program_id(1) == 0)
        def _():
            xt_ref[...] = jnp.tanh(x_ref[...]).astype(xt_ref.dtype)

        x = xt_ref[...]
    elif use_activation:
        # Cast back so bf16 inputs stay on the fast MXU path (v5e upcasts
        # tanh to f32 internally).
        x = jnp.tanh(x_ref[...]).astype(x_ref.dtype)
    else:
        x = x_ref[...]

    z = jnp.dot(x, w_ref[...], preferred_element_type=jnp.float32)
    z = z + b_ref[...].astype(jnp.float32)
    # sigmoid(z) = 1 / (1 + exp(-z)); exp (+ reciprocal) issue on the EUP.
    y = pl.reciprocal(1.0 + jnp.exp(-z), approx=approx_sigmoid)
    o_ref[...] = y.astype(o_ref.dtype)


# ----------------- fallback kernel: K-split, f32 accumulator -----------------

def _fc_sigmoid_kernel_ksplit(x_ref, w_ref, b_ref, o_ref, acc_ref, *,
                              use_activation, approx_sigmoid):
    k = pl.program_id(2)

    @pl.when(k == 0)
    def _init():
        acc_ref[...] = jnp.zeros_like(acc_ref)

    x = x_ref[...]
    if use_activation:
        # TODO(synk): tanh is recomputed for every (j, k) tile here; cache it
        # in a (bm, Kp) VMEM scratch if profiling shows EUP/VALU saturation.
        x = jnp.tanh(x).astype(x_ref.dtype)

    acc_ref[...] += jnp.dot(x, w_ref[...], preferred_element_type=jnp.float32)

    @pl.when(k == pl.num_programs(2) - 1)
    def _finalize():
        z = acc_ref[...] + b_ref[...].astype(jnp.float32)
        y = pl.reciprocal(1.0 + jnp.exp(-z), approx=approx_sigmoid)
        o_ref[...] = y.astype(o_ref.dtype)


def fc_layer_sigmoid(x, w, b, *, use_activation=True,
                     block_m=512, block_n=512, block_k=1024,
                     force_k_split=False):
    """y = sigmoid(linear(tanh(dropout(x)))) with dropout in eval mode.

    x: [B, D_in]
    w: [D_in, D_out]   (transposed PyTorch weight)
    b: [D_out] or [1, D_out]
    """
    B, D_in = x.shape
    D_out = w.shape[1]
    b = b.reshape(1, -1)
    out_dtype = x.dtype

    in_bytes = jnp.dtype(x.dtype).itemsize
    b_bytes = jnp.dtype(b.dtype).itemsize
    out_bytes = jnp.dtype(out_dtype).itemsize
    approx_sigmoid = out_bytes < 4  # bf16/fp8 outputs: EUP vrcp is plenty

    # vreg/MXU-friendly padded extents (sublane 8, lane 128).
    Bp = _round_up(B, 8)
    Kp = _round_up(D_in, 128)
    Np = _round_up(D_out, 128)

    bm = min(block_m, Bp)
    bn = min(block_n, Np)
    Bp = _round_up(Bp, bm)
    Np = _round_up(Np, bn)

    # v7x has 2 TensorCores: if the parallel grid would be 1x1, split N so
    # both cores get work (harmless on single-TC v5e/v6e: only fires for tiny
    # grids where the extra step overhead is negligible).
    if Bp // bm == 1 and Np // bn == 1 and Np >= 256:
        half = Np // 2
        bn = half if half % 128 == 0 else 128

    ni, nj = Bp // bm, Np // bn

    cap = _vmem_capacity_bytes()
    budget_cap = (cap * 3) // 4      # ~48 MiB on v7x, ~96 MiB on v5e/v6e
    headroom = 4 << 20

    # Cache tanh(x) only when the N axis is revisited AND the batch axis alone
    # gives >=2 parallel blocks (the cache needs the j axis to be "arbitrary",
    # i.e. swept sequentially per core).
    cache_tanh = bool(use_activation) and nj > 1 and ni > 1

    # Can the whole K extent live in VMEM?  Then drop the K grid axis.
    single_k_need = (2 * bm * Kp * in_bytes        # x (double-buffered)
                     + 2 * Kp * bn * in_bytes      # w
                     + 2 * bn * b_bytes            # bias
                     + 2 * bm * bn * out_bytes     # out
                     + (bm * Kp * in_bytes if cache_tanh else 0))
    use_single_k = (not force_k_split) and (single_k_need + headroom <= budget_cap)

    if use_single_k:
        bk = Kp
        vmem_need = single_k_need
    else:
        bk = min(block_k, Kp)
        Kp = _round_up(Kp, bk)
        vmem_need = (2 * (bm * bk + bk * bn) * in_bytes
                     + 2 * bn * b_bytes
                     + 2 * bm * bn * out_bytes
                     + bm * bn * 4)                # f32 accumulator

    vmem_limit = max(min(vmem_need + headroom, budget_cap),
                     min(32 << 20, budget_cap))

    # Skip padding copies when the (static) shapes are already tile-aligned --
    # padding w re-streams the full weight matrix through HBM.
    xp = x if (Bp, Kp) == (B, D_in) else jnp.pad(
        x, ((0, Bp - B), (0, Kp - D_in)))
    wp = w if (Kp, Np) == (D_in, D_out) else jnp.pad(
        w, ((0, Kp - D_in), (0, Np - D_out)))
    bp = b if Np == D_out else jnp.pad(b, ((0, 0), (0, Np - D_out)))

    cost = pl.CostEstimate(
        flops=2 * B * D_in * D_out,
        transcendentals=(B * D_in if use_activation else 0) + B * D_out,
        bytes_accessed=((B * D_in + D_in * D_out) * in_bytes
                        + D_out * b_bytes + B * D_out * out_bytes),
    )

    if use_single_k:
        kernel = functools.partial(
            _fc_sigmoid_kernel_fused,
            use_activation=use_activation,
            cache_tanh=cache_tanh,
            approx_sigmoid=approx_sigmoid)
        scratch_shapes = [pltpu.VMEM((bm, Kp), x.dtype)] if cache_tanh else []
        dim_sem = ("parallel", "arbitrary") if cache_tanh else ("parallel", "parallel")
        out_p = pl.pallas_call(
            kernel,
            out_shape=jax.ShapeDtypeStruct((Bp, Np), out_dtype),
            grid_spec=pltpu.PrefetchScalarGridSpec(
                num_scalar_prefetch=0,
                grid=(ni, nj),
                in_specs=[
                    pl.BlockSpec((bm, Kp), lambda i, j: (i, 0)),   # x row-block
                    pl.BlockSpec((Kp, bn), lambda i, j: (0, j)),   # weight cols
                    pl.BlockSpec((1, bn), lambda i, j: (0, j)),    # bias
                ],
                out_specs=pl.BlockSpec((bm, bn), lambda i, j: (i, j)),
                scratch_shapes=scratch_shapes,
            ),
            compiler_params=pltpu.CompilerParams(
                dimension_semantics=dim_sem,
                vmem_limit_bytes=vmem_limit,
            ),
            cost_estimate=cost,
        )(xp, wp, bp)
    else:
        kernel = functools.partial(
            _fc_sigmoid_kernel_ksplit,
            use_activation=use_activation,
            approx_sigmoid=approx_sigmoid)
        out_p = pl.pallas_call(
            kernel,
            out_shape=jax.ShapeDtypeStruct((Bp, Np), out_dtype),
            grid_spec=pltpu.PrefetchScalarGridSpec(
                num_scalar_prefetch=0,
                grid=(ni, nj, Kp // bk),
                in_specs=[
                    pl.BlockSpec((bm, bk), lambda i, j, k: (i, k)),   # x tile
                    pl.BlockSpec((bk, bn), lambda i, j, k: (k, j)),   # weight tile
                    pl.BlockSpec((1, bn), lambda i, j, k: (0, j)),    # bias tile
                ],
                out_specs=pl.BlockSpec((bm, bn), lambda i, j, k: (i, j)),
                scratch_shapes=[pltpu.VMEM((bm, bn), jnp.float32)],
            ),
            compiler_params=pltpu.CompilerParams(
                dimension_semantics=("parallel", "parallel", "arbitrary"),
                vmem_limit_bytes=vmem_limit,
            ),
            cost_estimate=cost,
        )(xp, wp, bp)

    if (Bp, Np) == (B, D_out):
        return out_p
    return out_p[:B, :D_out]


if __name__ == "__main__":
    key = jax.random.PRNGKey(0)
    kx, kw, kb = jax.random.split(key, 3)
    highest = jax.lax.Precision.HIGHEST

    # --- small test, fused (single-K) path ---
    batch, input_dim, output_dim = 2, 32, 16
    x = jax.random.normal(kx, (batch, input_dim), dtype=jnp.float32)
    bound = 1.0 / jnp.sqrt(jnp.float32(input_dim))
    w = jax.random.uniform(kw, (input_dim, output_dim), jnp.float32,
                           minval=-bound, maxval=bound)
    b = jax.random.uniform(kb, (output_dim,), jnp.float32,
                           minval=-bound, maxval=bound)

    y = jax.block_until_ready(fc_layer_sigmoid(x, w, b, use_activation=True))
    y_ref = jax.nn.sigmoid(
        jnp.dot(jnp.tanh(x), w, precision=highest) + b[None, :])
    assert y.shape == (batch, output_dim), y.shape
    assert jnp.allclose(y, y_ref, atol=1e-5, rtol=1e-5), "fused path mismatch"

    # --- second test: exercise the K-split accumulator path + padding ---
    batch2, in2, out2 = 2, 300, 16
    x2 = jax.random.normal(kx, (batch2, in2), dtype=jnp.float32)
    bound2 = 1.0 / jnp.sqrt(jnp.float32(in2))
    w2 = jax.random.uniform(kw, (in2, out2), jnp.float32,
                            minval=-bound2, maxval=bound2)
    b2 = jax.random.uniform(kb, (out2,), jnp.float32,
                            minval=-bound2, maxval=bound2)
    y2 = jax.block_until_ready(
        fc_layer_sigmoid(x2, w2, b2, use_activation=True,
                         force_k_split=True, block_k=128))
    y2_ref = jax.nn.sigmoid(
        jnp.dot(jnp.tanh(x2), w2, precision=highest) + b2[None, :])
    assert y2.shape == (batch2, out2), y2.shape
    assert jnp.allclose(y2, y2_ref, atol=1e-5, rtol=1e-5), "k-split mismatch"

    print("KERNEL_OK")
</pallas_src>

<mosaic_0001>
module attributes {stable_mosaic.version = 11 : i64} {
  func.func @_fc_sigmoid_kernel_fused(%arg0: i32, %arg1: i32, %arg2: memref<8x128xf32, #tpu.memory_space<vmem>>, %arg3: memref<128x128xf32, #tpu.memory_space<vmem>>, %arg4: memref<1x128xf32, #tpu.memory_space<vmem>>, %arg5: memref<8x128xf32, #tpu.memory_space<vmem>>) attributes {dimension_semantics = [#tpu.dimension_semantics<parallel>, #tpu.dimension_semantics<parallel>], iteration_bounds = array<i64: 1, 1>, scalar_prefetch = 0 : i64, scratch_operands = 0 : i64, tpu.core_type = #tpu.core_type<tc>, window_params = [{transform_indices = @transform_0, window_bounds = array<i64: 8, 128>}, {transform_indices = @transform_1, window_bounds = array<i64: 128, 128>}, {transform_indices = @transform_2, window_bounds = array<i64: 1, 128>}, {transform_indices = @transform_3, window_bounds = array<i64: 8, 128>}]} {
    %c0 = arith.constant 0 : index
    %c0_0 = arith.constant 0 : index
    %0 = vector.load %arg2[%c0, %c0_0] : memref<8x128xf32, #tpu.memory_space<vmem>>, vector<8x128xf32>
    %1 = math.tanh %0 : vector<8x128xf32>
    %c0_1 = arith.constant 0 : index
    %c0_2 = arith.constant 0 : index
    %2 = vector.load %arg3[%c0_1, %c0_2] : memref<128x128xf32, #tpu.memory_space<vmem>>, vector<128x128xf32>
    %cst = arith.constant dense<0.000000e+00> : vector<8x128xf32>
    %3 = tpu.matmul %1, %2, %cst {dimension_numbers = #tpu.dot_dimension_numbers<[1], [0], [0], [1], [0, 0, 1, 1], [], []>} : vector<8x128xf32>, vector<128x128xf32>, vector<8x128xf32> -> vector<8x128xf32>
    %c0_3 = arith.constant 0 : index
    %c0_4 = arith.constant 0 : index
    %4 = vector.load %arg4[%c0_3, %c0_4] : memref<1x128xf32, #tpu.memory_space<vmem>>, vector<1x128xf32>
    %5 = vector.broadcast %4 : vector<1x128xf32> to vector<8x128xf32>
    %6 = arith.addf %3, %5 : vector<8x128xf32>
    %cst_5 = arith.constant 0.000000e+00 : f32
    %7 = vector.broadcast %cst_5 : f32 to vector<8x128xf32>
    %8 = arith.subf %7, %6 : vector<8x128xf32>
    %9 = math.exp %8 : vector<8x128xf32>
    %cst_6 = arith.constant 1.000000e+00 : f32
    %10 = vector.broadcast %cst_6 : f32 to vector<8x128xf32>
    %11 = arith.addf %10, %9 : vector<8x128xf32>
    %12 = tpu.reciprocal %11 : vector<8x128xf32> -> vector<8x128xf32>
    %c0_7 = arith.constant 0 : index
    %c0_8 = arith.constant 0 : index
    %13 = vector.load %arg5[%c0_7, %c0_8] : memref<8x128xf32, #tpu.memory_space<vmem>>, vector<8x128xf32>
    tpu.vector_store %arg5[%c0_7, %c0_8], %12 {strides = array<i32>} : memref<8x128xf32, #tpu.memory_space<vmem>>, vector<8x128xf32>,
    return
  }
  func.func @transform_0(%arg0: i32, %arg1: i32) -> (i32, i32) {
    %c0_i32 = arith.constant 0 : i32
    %c0_i32_0 = arith.constant 0 : i32
    return %arg0, %c0_i32 : i32, i32
  }
  func.func @transform_1(%arg0: i32, %arg1: i32) -> (i32, i32) {
    %c0_i32 = arith.constant 0 : i32
    %c0_i32_0 = arith.constant 0 : i32
    return %c0_i32, %arg1 : i32, i32
  }
  func.func @transform_2(%arg0: i32, %arg1: i32) -> (i32, i32) {
    %c0_i32 = arith.constant 0 : i32
    %c0_i32_0 = arith.constant 0 : i32
    return %c0_i32, %arg1 : i32, i32
  }
  func.func @transform_3(%arg0: i32, %arg1: i32) -> (i32, i32) {
    %c0_i32 = arith.constant 0 : i32
    return %arg0, %arg1 : i32, i32
  }
}

</mosaic_0001>

<bundles_post_ra>
// kernel: tpu_custom_call.1
= control target key start
LH: loop header
LB: loop body
LE: loop exit
PB: predicated region body
PF: predicated region fallthrough
CT: control target
= control target key end

     0   :  { %8 = vsyncpa [#allocation3], 0  ;;  %s251_s0 = inlined_call_operand.hbm [shape: f32[8,128], index: 0, kind: input, shape index: {}]   ;;  %s252_s1 = inlined_call_operand.hbm [shape: f32[128,128], index: 1, kind: input, shape index: {}]   ;;  %s253_s2 = inlined_call_operand.vmem [shape: f32[1,128], index: 2, kind: input, shape index: {}]   ;;  %s254_s3 = inlined_call_operand.hbm [shape: f32[8,128], index: 3, kind: output, shape index: {}]  }
   0x1   :  { %9 = vsyncpa [#allocation6], 0 }
   0x2   :  { %10 = vsyncpa [#allocation4], 0  ;;  %s16_s14 = sshll.u32 %s251_s0, 4  ;;  %s214_s15 = smov [#allocation2]   ;;  %s17_s14 = int_to_ptr.hbm [resolvable:$true] %s16_s14 }
   0x3   :  { %s18_s16 = sshll.u32 %s214_s15, 4  ;;  %s26_s19 = sshll.u32 %s252_s1, 4  ;;  %s19_s16 = int_to_ptr.vmem [resolvable:$true] %s18_s16  ;;  %s27_s19 = int_to_ptr.hbm [resolvable:$true] %s26_s19 }
   0x4   :  { %21 = dma.hbm_to_vmem [thread:$0]  %s17_s14, 128, %s19_s16, [#allocation3]  }
   0x5   :  { %s215_s20 = smov [#allocation5]   ;;  %s216_s22 = smov 128  }
   0x6   :  { %s28_s21 = sshll.u32 %s215_s20, 4  ;;  %s217_s23 = smov 8   ;;  %s29_s21 = int_to_ptr.vmem [resolvable:$true] %s28_s21 }
   0x7   :  { %34 = dma.hbm_to_vmem [thread:$0]  %s27_s19, 2048, %s29_s21, [#allocation6], %s216_s22, %s216_s22, %s217_s23  }
   0x8   :  { %208 = dma.done.wait [#allocation3], 128  }
   0x9   :  { %209 = vsyncadd [#allocation3], 4294967168 }
   0xa   :  { %210 = dma.done.wait [#allocation6], 2048  }
   0xb   :  { %211 = vsyncadd [#allocation6], 4294965248  ;;  %v62_v0 = vld [vmem:[#allocation5 + $0x78] sm:$0xff]  ;;  %v61_v1 = vld [vmem:[#allocation5 + $0x70] sm:$0xff]  ;;  %s218_s24 = smov [#allocation7]  }
   0xc   :  { %67 = vmatpush.msra.mxu0 %v62_v0  ;;  %v60_v2 = vld [vmem:[#allocation5 + $0x68] sm:$0xff]  ;;  %v59_v3 = vld [vmem:[#allocation5 + $0x60] sm:$0xff]  ;;  %v58_v4 = vld [vmem:[#allocation5 + $0x58] sm:$0xff]  ;;  %s111_s25 = sshll.u32 %s218_s24, 4  ;;  %s112_s25 = int_to_ptr.vmem [resolvable:$true] %s111_s25 }
   0xd   :  { %v57_v5 = vld [vmem:[#allocation5 + $0x50] sm:$0xff]  ;;  %v56_v6 = vld [vmem:[#allocation5 + $0x48] sm:$0xff]  ;;  %v55_v7 = vld [vmem:[#allocation5 + $0x40] sm:$0xff] }
   0xe   :  { %68 = vmatpush.msra.mxu0 %v61_v1  ;;  %v54_v8 = vld [vmem:[#allocation5 + $0x38] sm:$0xff]  ;;  %v53_v9 = vld [vmem:[#allocation5 + $0x30] sm:$0xff]  ;;  %v52_v10 = vld [vmem:[#allocation5 + $0x28] sm:$0xff] }
   0xf   :  { %v51_v11 = vld [vmem:[#allocation5 + $0x20] sm:$0xff]  ;;  %v45_v12 = vld [vmem:[#allocation2] sm:$0xff]  ;;  %v49_v14 = vld [vmem:[#allocation5 + $0x10] sm:$0xff] }
  0x10   :  { %69 = vmatpush.msra.mxu0 %v60_v2  ;;  %v50_v13 = vld [vmem:[#allocation5 + $0x18] sm:$0xff]  ;;  %130 = vtanh.f32 %v45_v12  ;;  %v48_v15 = vld [vmem:[#allocation5 + $0x8] sm:$0xff]  ;;  %v47_v16 = vld [vmem:[#allocation5] sm:$0xff] }
  0x11   :  { %v129_v18 = vld [vmem:[%s253_s2] ss:$0 sm:$0xff]  ;;  %s113_s2 = sshll.u32 %s254_s3, 4  ;;  %s114_s2 = int_to_ptr.hbm [resolvable:$true] %s113_s2 }
  0x12   :  { %70 = vmatpush.msra.mxu0 %v59_v3 }
  0x14   :  { %71 = vmatpush.msra.mxu0 %v58_v4 }
  0x16   :  { %72 = vmatpush.msra.mxu0 %v57_v5  ;;  %v131_v17 = vpop.eup %130 }
  0x18   :  { %73 = vmatpush.msra.mxu0 %v56_v6 }
  0x1a   :  { %74 = vmatpush.msra.mxu0 %v55_v7 }
  0x1c   :  { %75 = vmatpush.msra.mxu0 %v54_v8 }
  0x1e   :  { %76 = vmatpush.msra.mxu0 %v53_v9 }
  0x20   :  { %77 = vmatpush.msra.mxu0 %v52_v10 }
  0x22   :  { %78 = vmatpush.msra.mxu0 %v51_v11 }
  0x24   :  { %79 = vmatpush.msra.mxu0 %v50_v13 }
  0x26   :  { %80 = vmatpush.msra.mxu0 %v49_v14 }
  0x28   :  { %81 = vmatpush.msra.mxu0 %v48_v15 }
  0x2a   :  { %82 = vmatpush.msra.mxu0 %v47_v16 }
  0x2b   :  { %83 = vmatmul.f32.vlgmr.msra.gmra.mxu0 %v131_v17 }
  0xa8   :  { %v84_v19 = vpop.f32.mrf.mxu0 }
  0xa9   :  { %v85_v20 = vadd.f32 %v129_v18, %v84_v19 }
  0xab   :  { %v87_v21 = vsub.f32 0.0, %v85_v20 }
  0xad   :  { %v88_v22 = vmul.f32 1.442695, %v87_v21 }
  0xaf   :  { %132 = vpow2.f32 %v88_v22 }
  0xb5   :  { %v133_v23 = vpop.eup %132 }
  0xb6   :  { %v90_v24 = vadd.f32 1.0, %v133_v23 }
  0xb8   :  { %134 = vrcp.f32 %v90_v24  ;;  %v102_v28 = vand.u32 2147483648, %v90_v24  ;;  %v100_v30 = vand.u32 2147483647, %v90_v24  ;;  %vm96_vm1 = vweird.f32 %v90_v24 }
  0xba   :  { %v103_v32 = vor.u32 1.1754944e-38, %v102_v28  ;;  %vm101_vm3 = vcmp.eq.f32.partialorder %v100_v30, 8.507059e+37 }
  0xbe   :  { %v135_v25 = vpop.eup %134 }
  0xbf   :  { %v92_v26 = vmul.f32 %v135_v25, %v90_v24  ;;  %vm97_vm0 = vweird.f32 %v135_v25 }
  0xc0   :  { %vm98_vm2 = vmor %vm96_vm1, %vm97_vm0 }
  0xc1   :  { %v93_v27 = vsub.f32 1.0, %v92_v26 }
  0xc3   :  { %v94_v29 = vmul.f32 %v135_v25, %v93_v27 }
  0xc5   :  { %v95_v31 = vadd.f32 %v135_v25, %v94_v29 }
  0xc7   :  { %v99_v33 = vsel %vm98_vm2, %v135_v25, %v95_v31 }
  0xc8   :  { %v104_v34 = vsel %vm101_vm3, %v103_v32, %v99_v33 }
  0xc9   :  { %105 = vst [vmem:[#allocation7] sm:$0xff] %v104_v34 }
  0xca   :  { %116 = dma.vmem_to_hbm [thread:$0]  %s112_s25, 128, %s114_s2, [#allocation4]  }
  0xcb   :  { %212 = dma.done.wait [#allocation4], 128  }
  0xcc   :  { %213 = vsyncadd [#allocation4], 4294967168 }
  0xcd   :  { %121 = vsyncpa [#allocation3], 1 }
  0xce   :  { %122 = vsyncpa [#allocation6], 1 }
  0xcf   :  { %123 = vsyncpa [#allocation4], 1 }

</bundles_post_ra>
